<compile_context>
chip_gen: v5e
topology: v5e:2x2
jax: 0.10.0
libtpu: 0.0.40
codegen_flags: <defaults>
</compile_context>

<pallas_src>
import math
import functools

import jax
import jax.numpy as jnp
from jax import lax
from jax.experimental import pallas as pl
from jax.experimental.pallas import tpu as pltpu


def _round_up(x, m):
    return (x + m - 1) // m * m


def _cdiv(a, b):
    return (a + b - 1) // b


def _flash_attn_kernel(vl_ref, q_ref, k_ref, v_ref, o_ref,
                       m_ref, l_ref, acc_ref, *,
                       scale, lk_real, tk, mm_dtype, has_mask, has_kpad):
    """One (batch, Q-tile, K-tile) grid step of masked attention.

    Online (flash-style) softmax: K/V stream along the last ('arbitrary') grid
    axis while (m, l, acc) accumulate in VMEM scratch.  Torch semantics are
    preserved: invalid key positions get the finite value -1e6 (NOT -inf)
    before a plain softmax, so valid_length == 0 rows come out as the uniform
    average of V, same as the PyTorch module.
    """
    b = pl.program_id(0)
    ki = pl.program_id(2)

    @pl.when(ki == 0)
    def _():
        m_ref[...] = jnp.full_like(m_ref, -jnp.inf)
        l_ref[...] = jnp.zeros_like(l_ref)
        acc_ref[...] = jnp.zeros_like(acc_ref)

    vl = vl_ref[b]

    def _tile_update():
        # Fold the softmax scale into Q: TQ*D multiplies instead of scaling the
        # (TQ, TK) score matrix every step.
        q = (q_ref[0] * scale).astype(mm_dtype)        # (TQ, D)
        k = k_ref[0].astype(mm_dtype)                  # (TK, D)
        v = v_ref[0]                                   # (TK, Dv)

        # Q @ K^T: contract the last axes of both operands (no explicit K
        # transpose / XLU relayout), f32 accumulation on the MXU.
        s = lax.dot_general(q, k, (((1,), (1,)), ((), ())),
                            preferred_element_type=jnp.float32)  # (TQ, TK)

        if has_mask or has_kpad:
            # Single fused select built from a (1, TK) iota row.  Real-but-
            # masked keys get torch's finite -1e6; zero-padded key columns
            # (only in the rare Lk-padding fallback) get -inf so they never
            # enter the softmax denominator.
            col = ki * tk + lax.broadcasted_iota(jnp.int32, (1, s.shape[-1]), 1)
            if has_kpad:
                fill = jnp.where(col >= lk_real, -jnp.inf, jnp.float32(-1e6))
            else:
                fill = jnp.float32(-1e6)
            s = jnp.where(col >= vl, fill, s)

        # Online softmax update.
        m_prev = m_ref[...]                                       # (TQ, 1)
        m_new = jnp.maximum(m_prev, jnp.max(s, axis=-1, keepdims=True))
        alpha = jnp.exp(m_prev - m_new)
        p = jnp.exp(s - m_new)                                    # (TQ, TK)
        l_ref[...] = alpha * l_ref[...] + jnp.sum(p, axis=-1, keepdims=True)
        acc_ref[...] = alpha * acc_ref[...] + lax.dot_general(
            p.astype(mm_dtype), v.astype(mm_dtype), (((1,), (0,)), ((), ())),
            preferred_element_type=jnp.float32)
        m_ref[...] = m_new

    if has_mask:
        # Skip K tiles entirely past valid_length (their contribution is
        # exactly zero).  vl == 0 must still run every real tile so the output
        # stays the uniform average over all Lk keys (torch -1e6 + softmax).
        pl.when(jnp.logical_or(ki * tk < vl, vl == 0))(_tile_update)
    else:
        _tile_update()

    # TODO(synk): nn.Dropout is identity in eval mode; training-mode dropout
    # (pltpu.prng_*) is intentionally not applied here.

    @pl.when(ki == pl.num_programs(2) - 1)
    def _():
        denom = l_ref[...]
        # EUP approximate reciprocal + one Newton step (~f32 accurate; the EUP
        # slot is otherwise idle here).
        r = pl.reciprocal(denom, approx=True)
        r = r * (2.0 - denom * r)
        o_ref[0] = (acc_ref[...] * r).astype(o_ref.dtype)


def dot_product_attention(query, key, value, valid_length=None, dropout=0.0,
                          use_bf16_matmul=False):
    """Pallas equivalent of DotProductAttention.forward (eval mode)."""
    del dropout  # eval-mode dropout == identity

    B, Lq, D = query.shape
    _, Lk, Dk = key.shape
    _, _, Dv = value.shape
    assert Dk == D and key.shape[0] == B and value.shape[0] == B
    assert value.shape[1] == Lk

    scale = 1.0 / math.sqrt(D)
    out_dtype = query.dtype
    itemsize = jnp.dtype(out_dtype).itemsize
    sub = max(8, 32 // max(1, itemsize))      # sublane granule: 8 f32 / 16 bf16 / 32 i8

    # Optional bf16 MXU path for f32 inputs (f32 accumulation kept).
    # TODO(synk): fp8 P*V on v7x is possible but not wired in (quality flag).
    mm_dtype = jnp.bfloat16 if (use_bf16_matmul and out_dtype == jnp.float32) else out_dtype

    # ---- key/value tile size -------------------------------------------------
    try:
        kind = jax.devices()[0].device_kind.lower()
    except Exception:
        kind = ""
    is_v5e = ("v5e" in kind) or ("v5 lite" in kind) or ("v5lite" in kind)
    tk_max = 256 if is_v5e else 512           # v5e: single vst slot + 128-wide MXU

    if Lk <= tk_max:
        TK = Lk                               # block dim == full array dim: legal, no pad
    else:
        TK = 0
        for cand in range((tk_max // 128) * 128, 127, -128):   # prefer 128-multiples
            if Lk % cand == 0:
                TK = cand
                break
        if TK == 0:
            for cand in range((tk_max // sub) * sub, 127, -sub):
                if Lk % cand == 0:
                    TK = cand
                    break
        if TK == 0:
            TK = tk_max                       # rare fallback: zero-pad K/V along Lk
    Lk_pad = _round_up(Lk, TK)
    nk = Lk_pad // TK
    has_kpad = Lk_pad != Lk

    # ---- query tile size -----------------------------------------------------
    tq_max = 512
    TQ = min(tq_max, _round_up(Lq, sub))
    if B * _cdiv(Lq, TQ) < 2 and Lq > sub:
        # Keep >= 2 'parallel' grid points so both TensorCores on v7x get work.
        TQ = _round_up(_cdiv(Lq, 2), sub)
    Lq_pad = _round_up(Lq, TQ)
    nq = Lq_pad // TQ

    # ---- pad only what is unavoidable (never the feature dims) ---------------
    q_p = query if Lq_pad == Lq else jnp.pad(query, ((0, 0), (0, Lq_pad - Lq), (0, 0)))
    if has_kpad:
        k_p = jnp.pad(key, ((0, 0), (0, Lk_pad - Lk), (0, 0)))
        v_p = jnp.pad(value, ((0, 0), (0, Lk_pad - Lk), (0, 0)))
    else:
        k_p, v_p = key, value

    # ---- valid_length -> SMEM scalar prefetch (per-batch int32) --------------
    has_mask = valid_length is not None
    if not has_mask:
        vl = jnp.full((B,), Lk, dtype=jnp.int32)
    else:
        valid_length = jnp.asarray(valid_length)
        if valid_length.ndim != 1:
            # TODO(synk): 2-D per-query-row valid_length is not wired into the
            # SMEM scalar-prefetch path; the seq2seq decoder passes 1-D lengths.
            raise NotImplementedError("2-D valid_length not supported")
        vl = jnp.clip(valid_length.astype(jnp.int32), 0, Lk)

    # ---- index maps (prefetched vl ref is the trailing positional arg) -------
    q_map = lambda b, qi, ki, vl_s: (b, qi, 0)
    o_map = lambda b, qi, ki, vl_s: (b, qi, 0)
    if has_mask and nk > 1:
        def kv_map(b, qi, ki, vl_s):
            vlb = vl_s[b]
            last_needed = jnp.where(vlb == 0, nk - 1, jnp.maximum(vlb - 1, 0) // TK)
            # Clamping repeats the previous block index, so Pallas issues no new
            # K/V DMA for tiles past valid_length (compute is skipped too).
            return (b, jnp.minimum(ki, last_needed), 0)
    else:
        kv_map = lambda b, qi, ki, vl_s: (b, ki, 0)

    kernel = functools.partial(
        _flash_attn_kernel, scale=scale, lk_real=Lk, tk=TK,
        mm_dtype=mm_dtype, has_mask=has_mask, has_kpad=has_kpad)

    # ---- VMEM budget: I/O buffers + f32 (TQ,TK) temporaries, capped vs HW ----
    kv_bufs = 3 if nk > 2 else 2
    io_bytes = itemsize * (2 * TQ * D + kv_bufs * TK * (D + Dv) + 2 * TQ * Dv)
    scratch_bytes = 4 * (TQ * max(Dv, 128) + 2 * TQ * 128)     # acc + m + l (lane-padded)
    temp_bytes = 3 * 4 * TQ * TK                               # s, p, select temporaries
    try:
        phys_vmem = pltpu.get_tpu_info().vmem_capacity_bytes   # 64 MiB on v7x
    except Exception:
        phys_vmem = 64 << 20
    vmem_limit = int(min(max(2 * (io_bytes + scratch_bytes + temp_bytes), 8 << 20),
                         phys_vmem // 2))

    cost = pl.CostEstimate(
        flops=2 * B * Lq_pad * Lk_pad * (D + Dv),
        transcendentals=B * Lq_pad * Lk_pad,
        bytes_accessed=itemsize * (q_p.size + nq * (k_p.size + v_p.size)
                                   + B * Lq_pad * Dv),
    )

    def _build(kv_pipeline_mode):
        kv_extra = {} if kv_pipeline_mode is None else {"pipeline_mode": kv_pipeline_mode}
        return pl.pallas_call(
            kernel,
            out_shape=jax.ShapeDtypeStruct((B, Lq_pad, Dv), out_dtype),
            grid_spec=pltpu.PrefetchScalarGridSpec(
                num_scalar_prefetch=1,
                grid=(B, nq, nk),
                in_specs=[
                    pl.BlockSpec((1, TQ, D), q_map),                 # Q (unpadded D)
                    pl.BlockSpec((1, TK, D), kv_map, **kv_extra),    # K (unpadded D)
                    pl.BlockSpec((1, TK, Dv), kv_map, **kv_extra),   # V (unpadded Dv)
                ],
                out_specs=pl.BlockSpec((1, TQ, Dv), o_map),
                scratch_shapes=[
                    pltpu.VMEM((TQ, 1), jnp.float32),    # running max m
                    pltpu.VMEM((TQ, 1), jnp.float32),    # running denom l
                    pltpu.VMEM((TQ, Dv), jnp.float32),   # f32 output accumulator
                ],
            ),
            compiler_params=pltpu.CompilerParams(
                dimension_semantics=("parallel", "parallel", "arbitrary"),
                vmem_limit_bytes=vmem_limit,
            ),
            cost_estimate=cost,
        )

    want_deep = nk > 2    # hide K/V DMA latency when streaming many short tiles
    try:
        out = _build(pl.Buffered(3) if want_deep else None)(vl, q_p, k_p, v_p)
    except Exception:
        if not want_deep:
            raise
        # Graceful fallback if this JAX build rejects pl.Buffered on top-level
        # pallas_call BlockSpecs.
        out = _build(None)(vl, q_p, k_p, v_p)

    return out[:, :Lq, :] if Lq_pad != Lq else out


def _reference(query, key, value, valid_length=None):
    """Pure-JAX reference mirroring the torch code (eval mode)."""
    d = query.shape[-1]
    scores = jnp.einsum("bqd,bkd->bqk", query, key) / math.sqrt(d)
    if valid_length is not None:
        B, Lq, Lk = scores.shape
        vlf = jnp.asarray(valid_length).astype(jnp.float32)
        if vlf.ndim == 1:
            vlf = jnp.broadcast_to(vlf[:, None], (B, Lq))
        mask = jnp.arange(Lk, dtype=jnp.float32)[None, None, :] >= vlf[:, :, None]
        scores = jnp.where(mask, -1000000.0, scores)
    w = jax.nn.softmax(scores, axis=-1)
    return jnp.einsum("bqk,bkd->bqd", w, value)


if __name__ == "__main__":
    root = jax.random.PRNGKey(0)
    kq, kk, kv, kq2, kk2, kv2 = jax.random.split(root, 6)

    # --- small shapes mirroring the torch module's demo usage -----------------
    B, Lq, Lk, D, Dv = 2, 8, 8, 16, 16
    query = jax.random.normal(kq, (B, Lq, D), dtype=jnp.float32)
    key_ = jax.random.normal(kk, (B, Lk, D), dtype=jnp.float32)
    value = jax.random.normal(kv, (B, Lk, Dv), dtype=jnp.float32)
    valid_length = jnp.array([3, 6], dtype=jnp.int32)

    out = jax.block_until_ready(dot_product_attention(query, key_, value, valid_length))
    ref = _reference(query, key_, value, valid_length)
    assert out.shape == (B, Lq, Dv)
    assert jnp.allclose(out, ref, atol=5e-5, rtol=5e-5), "mismatch vs reference (masked)"

    out_nm = jax.block_until_ready(dot_product_attention(query, key_, value, None))
    ref_nm = _reference(query, key_, value, None)
    assert jnp.allclose(out_nm, ref_nm, atol=5e-5, rtol=5e-5), "mismatch vs reference (no mask)"

    # --- larger shapes: streamed K/V, masked-tile skipping, and vl == 0 -------
    B2, Lq2, Lk2, D2, Dv2 = 3, 300, 640, 32, 48
    q2 = jax.random.normal(kq2, (B2, Lq2, D2), dtype=jnp.float32)
    k2 = jax.random.normal(kk2, (B2, Lk2, D2), dtype=jnp.float32)
    v2 = jax.random.normal(kv2, (B2, Lk2, Dv2), dtype=jnp.float32)
    vl2 = jnp.array([0, 5, 613], dtype=jnp.int32)   # uniform-avg, heavy skip, near-full

    out2 = jax.block_until_ready(dot_product_attention(q2, k2, v2, vl2))
    ref2 = _reference(q2, k2, v2, vl2)
    assert out2.shape == (B2, Lq2, Dv2)
    assert jnp.allclose(out2, ref2, atol=5e-5, rtol=5e-5), "mismatch vs reference (tiled)"

    # --- optional bf16-MXU path (f32 accumulation), loose tolerance -----------
    out_bf = jax.block_until_ready(
        dot_product_attention(q2, k2, v2, vl2, use_bf16_matmul=True))
    assert jnp.allclose(out_bf, ref2, atol=1e-1, rtol=1e-1), "mismatch vs reference (bf16)"

    print("KERNEL_OK")
</pallas_src>

<mosaic_0001>
module attributes {stable_mosaic.version = 11 : i64} {
  func.func @_flash_attn_kernel(%arg0: i32, %arg1: i32, %arg2: i32, %arg3: memref<2xi32, #tpu.memory_space<smem>>, %arg4: memref<1x8x16xf32, #tpu.memory_space<vmem>>, %arg5: memref<1x8x16xf32, #tpu.memory_space<vmem>>, %arg6: memref<1x8x16xf32, #tpu.memory_space<vmem>>, %arg7: memref<1x8x16xf32, #tpu.memory_space<vmem>>, %arg8: memref<8x1xf32, #tpu.memory_space<vmem>>, %arg9: memref<8x1xf32, #tpu.memory_space<vmem>>, %arg10: memref<8x16xf32, #tpu.memory_space<vmem>>) attributes {dimension_semantics = [#tpu.dimension_semantics<parallel>, #tpu.dimension_semantics<parallel>, #tpu.dimension_semantics<arbitrary>], iteration_bounds = array<i64: 2, 1, 1>, scalar_prefetch = 1 : i64, scratch_operands = 3 : i64, tpu.core_type = #tpu.core_type<tc>, window_params = [{transform_indices = @transform_0, window_bounds = array<i64: 1, 8, 16>}, {transform_indices = @transform_1, window_bounds = array<i64: 1, 8, 16>}, {transform_indices = @transform_2, window_bounds = array<i64: 1, 8, 16>}, {transform_indices = @transform_3, window_bounds = array<i64: 1, 8, 16>}]} {
    %c0_i32 = arith.constant 0 : i32
    %0 = arith.cmpi eq, %arg2, %c0_i32 : i32
    %1 = arith.extui %0 : i1 to i32
    %c0_i32_0 = arith.constant 0 : i32
    %2 = arith.cmpi ne, %1, %c0_i32_0 : i32
    scf.if %2 {
      %cst = arith.constant 0xFF800000 : f32
      %14 = vector.broadcast %cst : f32 to vector<8x1xf32>
      %c0 = arith.constant 0 : index
      %c0_5 = arith.constant 0 : index
      %15 = vector.load %arg8[%c0, %c0_5] : memref<8x1xf32, #tpu.memory_space<vmem>>, vector<8x1xf32>
      tpu.vector_store %arg8[%c0, %c0_5], %14 {strides = array<i32>} : memref<8x1xf32, #tpu.memory_space<vmem>>, vector<8x1xf32>,
      %cst_6 = arith.constant 0.000000e+00 : f32
      %16 = vector.broadcast %cst_6 : f32 to vector<8x1xf32>
      %c0_7 = arith.constant 0 : index
      %c0_8 = arith.constant 0 : index
      %17 = vector.load %arg9[%c0_7, %c0_8] : memref<8x1xf32, #tpu.memory_space<vmem>>, vector<8x1xf32>
      tpu.vector_store %arg9[%c0_7, %c0_8], %16 {strides = array<i32>} : memref<8x1xf32, #tpu.memory_space<vmem>>, vector<8x1xf32>,
      %cst_9 = arith.constant 0.000000e+00 : f32
      %18 = vector.broadcast %cst_9 : f32 to vector<8x16xf32>
      %c0_10 = arith.constant 0 : index
      %c0_11 = arith.constant 0 : index
      %19 = vector.load %arg10[%c0_10, %c0_11] : memref<8x16xf32, #tpu.memory_space<vmem>>, vector<8x16xf32>
      tpu.vector_store %arg10[%c0_10, %c0_11], %18 {strides = array<i32>} : memref<8x16xf32, #tpu.memory_space<vmem>>, vector<8x16xf32>,
    } else {
    }
    %3 = arith.index_cast %arg0 : i32 to index
    %4 = memref.load %arg3[%3] : memref<2xi32, #tpu.memory_space<smem>>
    %c8_i32 = arith.constant 8 : i32
    %5 = arith.muli %arg2, %c8_i32 : i32
    %6 = arith.cmpi slt, %5, %4 : i32
    %c0_i32_1 = arith.constant 0 : i32
    %7 = arith.cmpi eq, %4, %c0_i32_1 : i32
    %8 = arith.ori %6, %7 : i1
    %9 = arith.extui %8 : i1 to i32
    %c0_i32_2 = arith.constant 0 : i32
    %10 = arith.cmpi ne, %9, %c0_i32_2 : i32
    scf.if %10 {
      %c0 = arith.constant 0 : index
      %c0_5 = arith.constant 0 : index
      %c0_6 = arith.constant 0 : index
      %14 = vector.load %arg4[%c0, %c0_5, %c0_6] : memref<1x8x16xf32, #tpu.memory_space<vmem>>, vector<1x8x16xf32>
      %15 = vector.shape_cast %14 : vector<1x8x16xf32> to vector<8x16xf32>
      %cst = arith.constant 2.500000e-01 : f32
      %16 = vector.broadcast %cst : f32 to vector<8x16xf32>
      %17 = arith.mulf %15, %16 : vector<8x16xf32>
      %c0_7 = arith.constant 0 : index
      %c0_8 = arith.constant 0 : index
      %c0_9 = arith.constant 0 : index
      %18 = vector.load %arg5[%c0_7, %c0_8, %c0_9] : memref<1x8x16xf32, #tpu.memory_space<vmem>>, vector<1x8x16xf32>
      %19 = vector.shape_cast %18 : vector<1x8x16xf32> to vector<8x16xf32>
      %c0_10 = arith.constant 0 : index
      %c0_11 = arith.constant 0 : index
      %c0_12 = arith.constant 0 : index
      %20 = vector.load %arg6[%c0_10, %c0_11, %c0_12] : memref<1x8x16xf32, #tpu.memory_space<vmem>>, vector<1x8x16xf32>
      %21 = vector.shape_cast %20 : vector<1x8x16xf32> to vector<8x16xf32>
      %cst_13 = arith.constant dense<0.000000e+00> : vector<8x8xf32>
      %22 = tpu.matmul %17, %19, %cst_13 {dimension_numbers = #tpu.dot_dimension_numbers<[1], [1], [0], [0], [0, 0, 1, 0], [], []>} : vector<8x16xf32>, vector<8x16xf32>, vector<8x8xf32> -> vector<8x8xf32>
      %c8_i32_14 = arith.constant 8 : i32
      %23 = arith.muli %arg2, %c8_i32_14 : i32
      %24 = tpu.iota {dimensions = array<i32: 1>} : vector<1x8xi32>
      %25 = vector.broadcast %23 : i32 to vector<1x8xi32>
      %26 = arith.addi %25, %24 : vector<1x8xi32>
      %27 = vector.broadcast %4 : i32 to vector<1x8xi32>
      %28 = arith.cmpi sge, %26, %27 : vector<1x8xi32>
      %cst_15 = arith.constant -1.000000e+06 : f32
      %29 = vector.shape_cast %28 : vector<1x8xi1> to vector<1x8xi1>
      %30 = vector.broadcast %29 : vector<1x8xi1> to vector<8x8xi1>
      %31 = vector.broadcast %cst_15 : f32 to vector<8x8xf32>
      %32 = arith.select %30, %31, %22 : vector<8x8xi1>, vector<8x8xf32>
      %c0_16 = arith.constant 0 : index
      %c0_17 = arith.constant 0 : index
      %33 = vector.load %arg8[%c0_16, %c0_17] : memref<8x1xf32, #tpu.memory_space<vmem>>, vector<8x1xf32>
      %cst_18 = arith.constant dense<0xFF800000> : vector<8xf32>
      %34 = vector.multi_reduction <maximumf>, %32, %cst_18 [1] : vector<8x8xf32> to vector<8xf32>
      %35 = vector.shape_cast %34 : vector<8xf32> to vector<8x1xf32>
      %36 = arith.maximumf %33, %35 : vector<8x1xf32>
      %37 = arith.subf %33, %36 : vector<8x1xf32>
      %38 = math.exp %37 : vector<8x1xf32>
      %39 = vector.broadcast %36 : vector<8x1xf32> to vector<8x8xf32>
      %40 = arith.subf %32, %39 : vector<8x8xf32>
      %41 = math.exp %40 : vector<8x8xf32>
      %c0_19 = arith.constant 0 : index
      %c0_20 = arith.constant 0 : index
      %42 = vector.load %arg9[%c0_19, %c0_20] : memref<8x1xf32, #tpu.memory_space<vmem>>, vector<8x1xf32>
      %43 = arith.mulf %38, %42 : vector<8x1xf32>
      %cst_21 = arith.constant dense<0.000000e+00> : vector<8xf32>
      %44 = vector.multi_reduction <add>, %41, %cst_21 [1] : vector<8x8xf32> to vector<8xf32>
      %45 = vector.shape_cast %44 : vector<8xf32> to vector<8x1xf32>
      %46 = arith.addf %43, %45 : vector<8x1xf32>
      %c0_22 = arith.constant 0 : index
      %c0_23 = arith.constant 0 : index
      %47 = vector.load %arg9[%c0_22, %c0_23] : memref<8x1xf32, #tpu.memory_space<vmem>>, vector<8x1xf32>
      tpu.vector_store %arg9[%c0_22, %c0_23], %46 {strides = array<i32>} : memref<8x1xf32, #tpu.memory_space<vmem>>, vector<8x1xf32>,
      %c0_24 = arith.constant 0 : index
      %c0_25 = arith.constant 0 : index
      %48 = vector.load %arg10[%c0_24, %c0_25] : memref<8x16xf32, #tpu.memory_space<vmem>>, vector<8x16xf32>
      %49 = vector.broadcast %38 : vector<8x1xf32> to vector<8x16xf32>
      %50 = arith.mulf %49, %48 : vector<8x16xf32>
      %cst_26 = arith.constant dense<0.000000e+00> : vector<8x16xf32>
      %51 = tpu.matmul %41, %21, %cst_26 {dimension_numbers = #tpu.dot_dimension_numbers<[1], [0], [0], [1], [0, 0, 1, 1], [], []>} : vector<8x8xf32>, vector<8x16xf32>, vector<8x16xf32> -> vector<8x16xf32>
      %52 = arith.addf %50, %51 : vector<8x16xf32>
      %c0_27 = arith.constant 0 : index
      %c0_28 = arith.constant 0 : index
      %53 = vector.load %arg10[%c0_27, %c0_28] : memref<8x16xf32, #tpu.memory_space<vmem>>, vector<8x16xf32>
      tpu.vector_store %arg10[%c0_27, %c0_28], %52 {strides = array<i32>} : memref<8x16xf32, #tpu.memory_space<vmem>>, vector<8x16xf32>,
      %c0_29 = arith.constant 0 : index
      %c0_30 = arith.constant 0 : index
      %54 = vector.load %arg8[%c0_29, %c0_30] : memref<8x1xf32, #tpu.memory_space<vmem>>, vector<8x1xf32>
      tpu.vector_store %arg8[%c0_29, %c0_30], %36 {strides = array<i32>} : memref<8x1xf32, #tpu.memory_space<vmem>>, vector<8x1xf32>,
    } else {
    }
    %c0_i32_3 = arith.constant 0 : i32
    %11 = arith.cmpi eq, %arg2, %c0_i32_3 : i32
    %12 = arith.extui %11 : i1 to i32
    %c0_i32_4 = arith.constant 0 : i32
    %13 = arith.cmpi ne, %12, %c0_i32_4 : i32
    scf.if %13 {
      %c0 = arith.constant 0 : index
      %c0_5 = arith.constant 0 : index
      %14 = vector.load %arg9[%c0, %c0_5] : memref<8x1xf32, #tpu.memory_space<vmem>>, vector<8x1xf32>
      %15 = tpu.reciprocal %14 {approx = true} : vector<8x1xf32> -> vector<8x1xf32>
      %16 = arith.mulf %14, %15 : vector<8x1xf32>
      %cst = arith.constant 2.000000e+00 : f32
      %17 = vector.broadcast %cst : f32 to vector<8x1xf32>
      %18 = arith.subf %17, %16 : vector<8x1xf32>
      %19 = arith.mulf %15, %18 : vector<8x1xf32>
      %c0_6 = arith.constant 0 : index
      %c0_7 = arith.constant 0 : index
      %20 = vector.load %arg10[%c0_6, %c0_7] : memref<8x16xf32, #tpu.memory_space<vmem>>, vector<8x16xf32>
      %21 = vector.broadcast %19 : vector<8x1xf32> to vector<8x16xf32>
      %22 = arith.mulf %20, %21 : vector<8x16xf32>
      %c0_8 = arith.constant 0 : index
      %c0_9 = arith.constant 0 : index
      %c0_10 = arith.constant 0 : index
      %23 = vector.load %arg7[%c0_8, %c0_9, %c0_10] : memref<1x8x16xf32, #tpu.memory_space<vmem>>, vector<1x8x16xf32>
      %24 = vector.shape_cast %23 : vector<1x8x16xf32> to vector<8x16xf32>
      %25 = vector.shape_cast %22 : vector<8x16xf32> to vector<1x8x16xf32>
      tpu.vector_store %arg7[%c0_8, %c0_9, %c0_10], %25 {strides = array<i32>} : memref<1x8x16xf32, #tpu.memory_space<vmem>>, vector<1x8x16xf32>,
    } else {
    }
    return
  }
  func.func @transform_0(%arg0: i32, %arg1: i32, %arg2: i32, %arg3: memref<2xi32, #tpu.memory_space<smem>>) -> (i32, i32, i32) {
    %c0_i32 = arith.constant 0 : i32
    %c0_i32_0 = arith.constant 0 : i32
    return %arg0, %arg1, %c0_i32 : i32, i32, i32
  }
  func.func @transform_1(%arg0: i32, %arg1: i32, %arg2: i32, %arg3: memref<2xi32, #tpu.memory_space<smem>>) -> (i32, i32, i32) {
    %c0_i32 = arith.constant 0 : i32
    %c0_i32_0 = arith.constant 0 : i32
    return %arg0, %arg2, %c0_i32 : i32, i32, i32
  }
  func.func @transform_2(%arg0: i32, %arg1: i32, %arg2: i32, %arg3: memref<2xi32, #tpu.memory_space<smem>>) -> (i32, i32, i32) {
    %c0_i32 = arith.constant 0 : i32
    %c0_i32_0 = arith.constant 0 : i32
    return %arg0, %arg2, %c0_i32 : i32, i32, i32
  }
  func.func @transform_3(%arg0: i32, %arg1: i32, %arg2: i32, %arg3: memref<2xi32, #tpu.memory_space<smem>>) -> (i32, i32, i32) {
    %c0_i32 = arith.constant 0 : i32
    %c0_i32_0 = arith.constant 0 : i32
    return %arg0, %arg1, %c0_i32 : i32, i32, i32
  }
}

</mosaic_0001>

<bundles_post_ra>
// kernel: tpu_custom_call.1
= control target key start
LH: loop header
LB: loop body
LE: loop exit
PB: predicated region body
PF: predicated region fallthrough
CT: control target
= control target key end

     0   :  { %s880_s18 = smov [#allocation6]   ;;  %s1088_s0 = inlined_call_operand.hbm [shape: s32[2], index: 0, kind: input, shape index: {}]   ;;  %s1089_s1 = inlined_call_operand.hbm [shape: f32[2,8,16], index: 1, kind: input, shape index: {}]   ;;  %s1090_s2 = inlined_call_operand.hbm [shape: f32[2,8,16], index: 2, kind: input, shape index: {}]   ;;  %s1091_s3 = inlined_call_operand.hbm [shape: f32[2,8,16], index: 3, kind: input, shape index: {}]   ;;  %s1092_s4 = inlined_call_operand.hbm [shape: f32[2,8,16], index: 4, kind: output, shape index: {}]  }
   0x1   :  { %1095 = sst [smem:[#allocation21_spill]] %s1090_s2  ;;  %s10_s17 = sshll.u32 %s1088_s0, 4  ;;  %s11_s17 = int_to_ptr.hbm [resolvable:$true] %s10_s17 }
   0x2   :  { %13 = dma.hbm_to_smem %s11_s17, 16, %s880_s18, [#allocation5] }
   0x3   :  { %842 = dma.done.wait [#allocation5], 16 }
   0x4   :  { %843 = vsyncadd [#allocation5], 4294967280 }
   0x5   :  { %16 = sfence }
   0x6   :  { %17 = vsyncpa [#allocation8], 0 }
   0x7   :  { %19 = vsyncpa [#allocation8 + $0x1], 0 }
   0x8   :  { %20 = vsyncpa [#allocation11], 0 }
   0x9   :  { %22 = vsyncpa [#allocation11 + $0x1], 0 }
   0xa   :  { %23 = vsyncpa [#allocation9], 0 }
   0xb   :  { %25 = vsyncpa [#allocation9 + $0x1], 0  ;;  %s913_s19 = smov 0   ;;  %s915_s20 = smov 0  }
   0xc   :  { %s917_s21 = smov 0   ;;  %s919_s22 = smov 0  }
   0xd   :  { %s921_s0 = smov 0   ;;  %s923_s23 = smov 0  }
   0xe LB: > { %1096 = sst [smem:[#allocation18_spill]] %s874_s0  ;;  %s944_s24 = sadd.s32 4294967295, %s878_s23   ;;  %s878_s23 = sphi %s923_s23, %s31_s23   ;;  %s874_s0 = sphi %s921_s0, %s1112_s0   ;;  %s870_s22 = sphi %s919_s22, %s1107_s22   ;;  %s866_s21 = sphi %s917_s21, %s1111_s21   ;;  %s862_s20 = sphi %s915_s20, %s1110_s20   ;;  %s858_s19 = sphi %s913_s19, %s1109_s19  }
   0xf   : > { %s580_s25 = sadd.s32 4294967294, %s878_s23   ;;  %s50_s26 = sadd.s32 1, %s874_s0 }
  0x10   : > { %s59_s27 = sadd.s32 1, %s866_s21  ;;  %p52_p0 = scmp.ge.s32.totalorder %s50_s26, 2 }
  0x11   : > { %p66_p1 = scmp.ne.s32.totalorder %s866_s21, %s862_s20  ;;  %p67_p2 = scmp.eq.s32.totalorder %s878_s23, 0 }
  0x12   : > { %p72_p3 = scmp.ne.s32.totalorder %s862_s20, %s858_s19  ;;  %s1114_s26 = smov (%p52_p0, %s50_s26), 0 }
  0x13   : > { %1097 = sst [smem:[#allocation19_spill]] %s1114_s26  ;;  %p956_p4 = por %p67_p2, %p66_p1 }
  0x14   : > { %p73_p5 = scmp.eq.s32.totalorder %s944_s24, 0  ;;  %s54_s29 = ssub.s32 %s874_s0, %s1114_s26 }
  0x15   : > { %p154_p6 = scmp.eq.s32.totalorder %s944_s24, 1  ;;  %p57_p7 = scmp.eq.s32.totalorder %s54_s29, 0 }
  0x16   : > { %p964_p8 = por %p73_p5, %p72_p3  ;;  %p160_p10 = scmp.eq.s32.totalorder %s580_s25, 1 }
  0x17   : > { %p968_p9 = por %p154_p6, %p66_p1  ;;  %p582_p12 = scmp.ge.s32.totalorder %s878_s23, 2 }
  0x18   : > { %s973_s6 = scalar_select %p57_p7, %s866_s21, %s59_s27  }
  0x19   : > { %p975_p11 = por %p160_p10, %p72_p3  ;;  %p624_p13 = scmp.lt.s32.totalorder %s878_s23, 2 }
  0x1a   : > { %1101 = sst [smem:[#allocation20_spill]] %s973_s6  ;;  %s180_s8 = sand.u32 1, %s866_s21  }
  0x1b   : > { %s583_s9 = sshll.u32 %s180_s8, 3  ;;  %s584_s10 = sshll.u32 %s874_s0, 3 }
  0x1c   : > { %p985_p0 = pnand %p624_p13, %p956_p4  ;;  %s200_s12 = sand.u32 1, %s878_s23  }
  0x1d   : > { %s1104_s2 = sld [smem:[#allocation21_spill]]  ;;  %s204_s17 = scalar_lea.vmem [#allocation10], %s583_s9 }
  0x1e   : > { %s213_s18 = sshll.u32 %s204_s17, 4  ;;  %s201_s25 = scalar_lea.sflag [#allocation11], %s200_s12  ;;  %s214_s18 = int_to_ptr.vmem [resolvable:$true] %s213_s18 }
  0x1f   : > { %p589_p1 = scmp.ge.s32.totalorder %s878_s23, 1  ;;  %p238_p2 = scmp.lt.s32.totalorder %s878_s23, 3 }
  0x20   : > { %s189_s13 = scalar_lea.hbm %s1089_s1, %s584_s10  ;;  %s181_s17 = scalar_lea.sflag [#allocation8], %s180_s8 }
  0x21   : > { %p997_p3 = pnand %p589_p1, %p238_p2  ;;  %s191_s14 = sshll.u32 %s189_s13, 4  ;;  %s192_s14 = int_to_ptr.hbm [resolvable:$true] %s191_s14 }
  0x22   : > { %s224_s0 = scalar_lea.vmem [#allocation12], %s583_s9  ;;  %s1014_s28 = sand.u32 (!%p997_p3), 1, %s862_s20  }
  0x23   : > { %s209_s15 = scalar_lea.hbm %s1104_s2, %s584_s10  ;;  %s233_s6 = sshll.u32 %s224_s0, 4  ;;  %s234_s6 = int_to_ptr.vmem [resolvable:$true] %s233_s6 }
  0x24   : > { %s211_s16 = sshll.u32 %s209_s15, 4  ;;  %s184_s15 = scalar_lea.vmem [#allocation7], %s583_s9  ;;  %s212_s16 = int_to_ptr.hbm [resolvable:$true] %s211_s16 }
  0x25   : > { %616 = dma.hbm_to_vmem [thread:$0]  (!%p985_p0), %s212_s16, 128, %s214_s18, %s201_s25  }
  0x26   : > { %s193_s2 = sshll.u32 %s184_s15, 4  ;;  %s229_s18 = scalar_lea.hbm %s1091_s3, %s584_s10  ;;  %s194_s2 = int_to_ptr.vmem [resolvable:$true] %s193_s2 }
  0x27   : > { %613 = dma.hbm_to_vmem [thread:$0]  (!%p985_p0), %s192_s14, 128, %s194_s2, %s181_s17  }
  0x28   : > { %s231_s26 = sshll.u32 %s229_s18, 4  ;;  %242 = sbr.rel (%p997_p3) target bundleno = 697 (0x2b9), region = 32  ;;  %s232_s26 = int_to_ptr.hbm [resolvable:$true] %s231_s26 }
  0x29   : > { %619 = dma.hbm_to_vmem [thread:$0]  (!%p985_p0), %s232_s26, 128, %s234_s6, %s201_s25  }
  0x2a   : > { %s1017_s2 = sshll.u32 (!%p997_p3), %s1014_s28, 3  ;;  %s245_s8 = scalar_lea.sflag (!%p997_p3), [#allocation8], %s1014_s28 }
  0x2b   : > { %s248_s10 = scalar_lea.vmem (!%p997_p3), [#allocation7], %s1017_s2 }
  0x2d   : > { %845 = dma.done.wait (%p964_p8), %s245_s8, 128  }
  0x2e   : > { %847 = vsyncadd (%p964_p8), %s245_s8, 4294967168  ;;  %s254_s0 = sand.u32 1, %s944_s24   ;;  %s258_s6 = scalar_lea.vmem [#allocation10], %s1017_s2 }
  0x2f   : > { %s255_s26 = scalar_lea.sflag [#allocation11], %s254_s0 }
  0x30   : > { %849 = dma.done.wait (%p964_p8), %s255_s26, 256  }
  0x31   : > { %851 = vsyncadd (%p964_p8), %s255_s26, 4294967040  ;;  %vm306_vm0 = vcmask 7168   ;;  %s311_s9 = sld [smem:[#allocation6 + %s870_s22]]  ;;  %v881_v0 = vmov -inf   ;;  %vm309_vm1 = vcmask 130048   ;;  %v882_v1 = vmov 0.0  }
  0x32   : > { %307 = vst.msk [vmem:[#allocation2] sm:$0xff] %vm306_vm0, %v881_v0  ;;  %s268_s24 = scalar_lea.vmem [#allocation12], %s1017_s2  ;;  %s301_s30 = scalar_lea.vmem [#allocation13], %s1017_s2 }
  0x33   : > { %308 = vst.msk [vmem:[#allocation3] sm:$0xff] %vm306_vm0, %v882_v1 }
  0x34   : > { %310 = vst.msk [vmem:[#allocation4] sm:$0xff] %vm309_vm1, %v882_v1 }
  0x37   : > { %p594_p4 = scmp.gt.s32.totalorder %s311_s9, 0  ;;  %p314_p5 = scmp.eq.s32.totalorder %s311_s9, 0 }
  0x39   : > { %p315_p6 = por %p594_p4, %p314_p5 }
  0x3a   : > { %v321_v2 = vld [vmem:[%s258_s6] sm:$0xff] (%p315_p6)  ;;  %v319_v3 = vld [vmem:[%s248_s10] sm:$0xff] (%p315_p6)  ;;  %v350_v5 = vlaneseq (%p315_p6)  ;;  %v354_v7 = vstv (%p315_p6), %s311_s9  ;;  %vm360_vm3 = vcmask (%p315_p6), 64512   ;;  %v883_v11 = vmov (%p315_p6), 0  }
  0x3b   : > { %318 = sbr.rel (!%p315_p6) target bundleno = 563 (0x233), region = 52  ;;  %595 = vmatpush.xpose.msk.msra.mxu0 (%p315_p6), %vm309_vm1, %v321_v2  ;;  %v320_v4 = vmul.f32 (%p315_p6), 0.25, %v319_v3  ;;  %679 = vset.pattern.permute.xlu0 (%p315_p6), %v883_v11  ;;  %v359_v12 = vld [vmem:[#allocation2] sm:$0xff] (%p315_p6)  ;;  %v376_v25 = vld [vmem:[#allocation3] sm:$0xff] (%p315_p6)  ;;  %v384_v29 = vld [vmem:[#allocation4] sm:$0xff] (%p315_p6) }
  0x3c   : > { %v351_v6 = vand.u32 (%p315_p6), 127, %v350_v5  ;;  %680 = vset.pattern.permute.xlu1 (%p315_p6), %v883_v11  ;;  %v322_v18 = vld [vmem:[%s268_s24] sm:$0xff] (%p315_p6) }
  0x3d   : > { %409 = vmatpush.msra.mxu1 (%p315_p6), %v322_v18 }
  0x3e   : > { %596 = vmatmul.msk.f32.vlgmr.msra.gmra.mxu0 (%p315_p6), %vm309_vm1, %v320_v4  ;;  %vm355_vm2 = vcmp.ge.s32.totalorder (%p315_p6), %v351_v6, %v354_v7 }
  0xbb   : > { %v347_v8 = vpop.f32.mrf.mxu0 }
  0xbc   : > { %v358_v9 = vsel %vm355_vm2, -1000000.0, %v347_v8 }
  0xbd   : > { %v361_v10 = vsel %vm360_vm3, %v358_v9, -inf }
  0xbe   : > { %362 = vmax.xlane.f32.xlu0 %v361_v10 }
 0x131   : > { %v363_v13 = vpop.xlane.xlu0 %362 }
 0x132   : > { %v364_v14 = vmax.f32 %v359_v12, %v363_v13 }
 0x134   : > { %v365_v15 = vsub.f32 %v359_v12, %v364_v14  ;;  %416 = vst.msk [vmem:[#allocation2] sm:$0xff] %vm306_vm0, %v364_v14  ;;  %370 = vperm.xlu0 %679, %v364_v14  }
 0x136   : > { %v366_v16 = vmul.f32 1.442695, %v365_v15 }
 0x138   : > { %681 = vpow2.f32 %v366_v16 }
 0x13e   : > { %v682_v17 = vpop.eup %681 }
 0x13f   : > { %387 = vperm.xlu1 %680, %v682_v17   ;;  %v377_v26 = vmul.f32 %v682_v17, %v376_v25 }
 0x1a6   : > { %v371_v19 = vpop.permute.xlu0 %370 }
 0x1a7   : > { %v373_v20 = vsub.f32 %v358_v9, %v371_v19 }
 0x1a9   : > { %v374_v21 = vmul.f32 1.442695, %v373_v20 }
 0x1ab   : > { %683 = vpow2.f32 %v374_v21 }
 0x1b1   : > { %v684_v22 = vpop.eup %683  ;;  %v388_v24 = vpop.permute.xlu1 %387 }
 0x1b2   : > { %597 = vmatmul.msk.f32.vlgmr.msra.gmra.mxu1 %vm360_vm3, %v684_v22  ;;  %v378_v23 = vsel %vm360_vm3, %v684_v22, 0.0  ;;  %v390_v30 = vmul.f32 %v388_v24, %v384_v29 }
 0x1b3   : > { %379 = vadd.xlane.f32.xlu1 %v378_v23 }
 0x226   : > { %v380_v27 = vpop.xlane.xlu1 %379 }
 0x227   : > { %v381_v28 = vadd.f32 %v380_v27, %v377_v26 }
 0x229   : > { %383 = vst.msk [vmem:[#allocation3] sm:$0xff] %vm306_vm0, %v381_v28 }
 0x22f   : > { %v411_v31 = vpop.f32.mrf.mxu1 }
 0x230   : > { %v414_v32 = vadd.f32 %v411_v31, %v390_v30 }
 0x232   : > { %415 = vst.msk [vmem:[#allocation4] sm:$0xff] %vm309_vm1, %v414_v32 }
 0x233 PF: > { %v420_v33 = vld [vmem:[#allocation3] sm:$0xff]  ;;  %v884_v34 = vmov 0   ;;  %s599_s11 = sshll.u32 %s870_s22, 3  ;;  %s448_s13 = sshll.u32 %s301_s30, 4  ;;  %s449_s13 = int_to_ptr.vmem [resolvable:$true] %s448_s13 }
 0x234   : > { %685 = vset.pattern.permute.xlu0 %v884_v34  ;;  %686 = vrcp.f32 %v420_v33  ;;  %s446_s29 = scalar_lea.hbm %s1092_s4, %s599_s11  ;;  %s435_s15 = scalar_lea.sflag [#allocation9], %s1014_s28 }
 0x235   : > { %s450_s14 = sshll.u32 %s446_s29, 4  ;;  %s810_s18 = scalar_lea.hbm %s1092_s4, 16  ;;  %s451_s14 = int_to_ptr.hbm [resolvable:$true] %s450_s14 }
 0x236   : > { %s804_s17 = sshra.s32 %s451_s14, 4  ;;  %s805_s17 = int_to_ptr.hbm [resolvable:$true] %s804_s17 }
 0x237   : > { %s806_s12 = scalar_lea.hbm %s805_s17, 8  ;;  %p811_p13 = scmp.lt.s32.totalorder %s805_s17, %s1092_s4 }
 0x238   : > { %p807_p7 = scmp.ne.s32.totalorder %s805_s17, %s806_s12  ;;  %p812_p0 = scmp.lt.s32.totalorder %s810_s18, %s806_s12 }
 0x239   : > { %v425_v39 = vld [vmem:[#allocation4] sm:$0xff] }
 0x23a   : > { %v687_v35 = vpop.eup %686  ;;  %p808_p8 = pnand %p807_p7, %p968_p9  ;;  %p813_p1 = por %p812_p0, %p811_p13 }
 0x23b   : > { %v422_v36 = vmul.f32 %v687_v35, %v420_v33 }
 0x23c   : > { %p809_p10 = pneg %p808_p8 }
 0x23d   : > { %v423_v37 = vsub.f32 2.0, %v422_v36 }
 0x23e   : > { %p814_p2 = pnand %p813_p1, %p809_p10 }
 0x23f   : > { %v424_v38 = vmul.f32 %v687_v35, %v423_v37 }
 0x241   : > { %428 = vperm.xlu0 %685, %v424_v38  }
 0x2b3   : > { %v429_v40 = vpop.permute.xlu0 %428 }
 0x2b4   : > { %v431_v41 = vmul.f32 %v429_v40, %v425_v39 }
 0x2b6   : > { %433 = vst.msk [vmem:[%s301_s30] sm:$0xff] %vm309_vm1, %v431_v41 }
 0x2b7   : > { %817 = shalt.err (!%p814_p2)
}
 0x2b8   : > { %608 = dma.vmem_to_hbm [thread:$0]  (%p968_p9), %s449_s13, 128, %s451_s14, %s435_s15  }
 0x2b9 PF: > { %s462_s28 = sand.u32 1, %s858_s19   ;;  %p621_p3 = pnand %p582_p12, %p975_p11 }
 0x2ba   : > { %s463_s2 = scalar_lea.sflag [#allocation9], %s462_s28 }
 0x2bb   : > { %p622_p4 = pneg %p621_p3 }
 0x2bd   : > { %853 = dma.done.wait (%p622_p4), %s463_s2, 128  }
 0x2be   : > { %855 = vsyncadd (%p622_p4), %s463_s2, 4294967168  ;;  %s31_s23 = sadd.s32 1, %s878_s23   ;;  %s1106_s0 = sld [smem:[#allocation20_spill]] }
 0x2bf   : > { %p28_p5 = scmp.ge.s32.totalorder %s31_s23, 4   ;;  %s1107_s22 = sld [smem:[#allocation18_spill]] }
 0x2c0   : > { %s1108_s5 = sld [smem:[#allocation19_spill]]  ;;  %s1109_s19 = smov %s862_s20 }
 0x2c1   : > { %s1110_s20 = smov %s866_s21 }
 0x2c2   :  { %30 = sbr.rel (!%p28_p5) target bundleno = 14 (0xe), region = 113 }
 0x2c4   : > { %s1111_s21 = smov %s1106_s0 }
 0x2c6   : > { %s1112_s0 = smov %s1108_s5 }
 0x2c7   :  { %469 = vsyncpa [#allocation8], 1 }
 0x2c8   :  { %471 = vsyncpa [#allocation8 + $0x1], 1 }
 0x2c9   :  { %472 = vsyncpa [#allocation11], 1 }
 0x2ca   :  { %474 = vsyncpa [#allocation11 + $0x1], 1 }
 0x2cb   :  { %475 = vsyncpa [#allocation9], 1 }
 0x2cc   :  { %477 = vsyncpa [#allocation9 + $0x1], 1 }

</bundles_post_ra>
